<compile_context>
chip_gen: v7x
topology: tpu7x:2x2x1
jax: 0.10.0
libtpu: 0.0.40
codegen_flags: <defaults>
</compile_context>

<pallas_src>
import jax
import jax.numpy as jnp
from jax import lax
from jax.experimental import pallas as pl
from jax.experimental.pallas import tpu as pltpu


def _row_logits(x_ref, w_ref):
    """Linear(S, 1) (no bias) on one [rows, S] tile -> [rows, 1] float32."""
    x = x_ref[...]
    w = w_ref[...]                                       # (1, S)
    if x.dtype == jnp.bfloat16 and w.dtype == jnp.bfloat16:
        prod = (x * w).astype(jnp.float32)               # bf16 mul, f32 accumulate
    else:
        prod = x.astype(jnp.float32) * w.astype(jnp.float32)
    return jnp.sum(prod, axis=1, keepdims=True)          # lane reduce (XLU)


def _single_block_kernel(x_ref, w_ref, o_ref):
    """Whole problem resident in VMEM: fused matvec + softmax over batch."""
    logits = _row_logits(x_ref, w_ref)                   # (B, 1) f32
    m = jnp.max(logits, axis=0, keepdims=True)           # (1, 1)
    e = jnp.exp(logits - m)
    s = jnp.sum(e, axis=0, keepdims=True)                # (1, 1)
    o_ref[...] = e / s                                   # exact normalization


def _make_streamed_kernel(B, TB, nt):
    need_mask = (nt * TB) != B                            # only last tile ragged

    def kernel(x_ref, w_ref, o_ref, m_part, m_run, l_run):
        i = pl.program_id(0)

        @pl.when(i == 0)
        def _init():
            m_run[...] = jnp.full_like(m_run, -jnp.inf)
            l_run[...] = jnp.zeros_like(l_run)

        logits = _row_logits(x_ref, w_ref)                # (TB, 1) f32

        if need_mask:
            # Padded rows of the last (ragged) block may hold garbage / NaN
            # from the DMA; mask with a select (never arithmetic masking).
            rows = lax.broadcasted_iota(jnp.int32, (TB, 1), 0)
            logits = jnp.where(i * TB + rows < B, logits, -jnp.inf)

        # Online exp: write exp(logit - m_tile) now, rescale once at the end.
        m_t = jnp.max(logits, axis=0, keepdims=True)      # (1, 1)
        e = jnp.exp(logits - m_t)                         # masked rows -> 0
        s_t = jnp.sum(e, axis=0, keepdims=True)           # (1, 1)

        m_part[i] = m_t
        base = pl.multiple_of(i * TB, 8)
        o_ref[pl.ds(base, TB), :] = e

        # Flash-style running (max, normalizer) across tiles.
        m_prev = m_run[...]
        m_new = jnp.maximum(m_prev, m_t)
        l_run[...] = (l_run[...] * jnp.exp(m_prev - m_new)
                      + s_t * jnp.exp(m_t - m_new))
        m_run[...] = m_new

        @pl.when(i == nt - 1)
        def _finalize():
            m_glob = m_run[...]                           # (1, 1)
            inv_z = 1.0 / l_run[...]                      # exact normalization

            # Cheap per-tile rescale of the resident slab (no exp over B).
            @pl.loop(0, nt)
            def _rescale(t):
                f = jnp.exp(m_part[t] - m_glob) * inv_z   # (1, 1)
                off = pl.multiple_of(t * TB, 8)
                o_ref[pl.ds(off, TB), :] = o_ref[pl.ds(off, TB), :] * f

    return kernel


def source_quantizer_forward(x, weight, bias=None, *,
                             block_bytes_target=4 << 20,
                             single_block_bytes=8 << 20):
    """Forward pass of source_quantizer(type='linear').

    x: [B, S], weight: [1, S] (PyTorch nn.Linear layout), bias: [1] (ignored:
    a single-unit bias is a constant shift and cancels under softmax over
    dim=0).  Returns [B, 1] float32 probabilities (softmax over the batch).
    """
    del bias  # exact: shift invariance of softmax over dim=0 with 1 output unit
    B, S = x.shape
    itemsize = x.dtype.itemsize
    row_bytes = S * itemsize

    use_bf16 = x.dtype == jnp.bfloat16
    w = jnp.asarray(weight).reshape(1, S).astype(
        jnp.bfloat16 if use_bf16 else jnp.float32)

    # ---- tile selection (budget-driven; collapse to one step when possible)
    if B * row_bytes + 4 * B <= single_block_bytes:
        TB, nt = B, 1
    else:
        TB = max(8, (block_bytes_target // row_bytes) // 8 * 8)
        TB = min(TB, ((B + 7) // 8) * 8)
        nt = pl.cdiv(B, TB)
    Bp = nt * TB                                   # padded batch rows

    if 4 * Bp > (16 << 20):
        # TODO(synk): fall back to a two-pass (parallel logits + tiny softmax)
        # kernel for extremely large batches (also enables dual-TC on v7x).
        raise NotImplementedError(
            "batch too large for the resident-slab softmax kernel")

    # ---- explicit VMEM budget (v5e scoped default 16 MiB, v7x 64 MiB phys)
    vmem_bytes = (2 * TB * row_bytes               # double-buffered x blocks
                  + 2 * Bp * 4                     # resident output slab
                  + 6 * TB * 4                     # per-tile f32 temporaries
                  + (2 << 20))                     # headroom
    vmem_bytes = int(min(max(vmem_bytes, 4 << 20), 100 << 20))

    cost = pl.CostEstimate(
        flops=2 * B * S + 6 * B,
        transcendentals=B,
        bytes_accessed=B * row_bytes + S * w.dtype.itemsize + Bp * 4,
    )

    if nt == 1:
        kernel = _single_block_kernel
        scratch_shapes = ()
    else:
        kernel = _make_streamed_kernel(B, TB, nt)
        scratch_shapes = (
            pltpu.VMEM((nt, 1, 1), jnp.float32),   # per-tile max
            pltpu.VMEM((1, 1), jnp.float32),       # running max
            pltpu.VMEM((1, 1), jnp.float32),       # running normalizer
        )

    out = pl.pallas_call(
        kernel,
        out_shape=jax.ShapeDtypeStruct((Bp, 1), jnp.float32),
        grid_spec=pltpu.PrefetchScalarGridSpec(
            num_scalar_prefetch=0,
            grid=(nt,),
            in_specs=[
                pl.BlockSpec((TB, S), lambda i: (i, 0)),   # streamed x (native layout)
                pl.BlockSpec((1, S), lambda i: (0, 0)),    # resident weight row
            ],
            # Constant block index -> output slab is VMEM-resident across the
            # whole grid and written back to HBM once.
            out_specs=pl.BlockSpec((Bp, 1), lambda i: (0, 0)),
            scratch_shapes=scratch_shapes,
        ),
        compiler_params=pltpu.CompilerParams(
            dimension_semantics=("arbitrary",),    # resident output => sequential
            vmem_limit_bytes=vmem_bytes,
        ),
        cost_estimate=cost,
    )(x, w)

    return out if Bp == B else out[:B]


def init_linear_params(key, source_num):
    """Matches init_weights: xavier_normal_ weight, zero bias."""
    std = (2.0 / (source_num + 1)) ** 0.5          # fan_in=source_num, fan_out=1
    weight = jax.random.normal(key, (1, source_num), dtype=jnp.float32) * std
    bias = jnp.zeros((1,), dtype=jnp.float32)
    return weight, bias


def _reference(x, weight, bias):
    logits = x.astype(jnp.float32) @ weight.T + bias
    return jax.nn.softmax(logits, axis=0)


if __name__ == "__main__":
    key = jax.random.PRNGKey(0)
    k_x, k_w, k_x2 = jax.random.split(key, 3)

    SOURCE_NUM = 4
    weight, bias = init_linear_params(k_w, SOURCE_NUM)

    # 1) Small batch -> single fused block (the module's typical regime).
    B1 = 8
    x1 = jax.random.normal(k_x, (B1, SOURCE_NUM), dtype=jnp.float32)
    out1 = jax.block_until_ready(source_quantizer_forward(x1, weight, bias))
    ref1 = _reference(x1, weight, bias)
    assert out1.shape == (B1, 1)
    assert jnp.allclose(out1, ref1, atol=1e-5, rtol=1e-5)
    assert jnp.allclose(jnp.sum(out1, axis=0), 1.0, atol=1e-5)

    # 2) Larger, ragged batch with forced small blocks -> exercises the
    #    streamed online-softmax path (tiling, masking, finalize rescale).
    B2 = 300
    x2 = jax.random.normal(k_x2, (B2, SOURCE_NUM), dtype=jnp.float32)
    out2 = jax.block_until_ready(
        source_quantizer_forward(
            x2, weight, bias,
            single_block_bytes=1024,
            block_bytes_target=128 * SOURCE_NUM * 4))
    ref2 = _reference(x2, weight, bias)
    assert out2.shape == (B2, 1)
    assert jnp.allclose(out2, ref2, atol=1e-5, rtol=1e-4)
    assert jnp.allclose(jnp.sum(out2, axis=0), 1.0, atol=1e-5)

    # 3) bf16 input -> bf16 multiply / f32 accumulate path.
    x3 = x1.astype(jnp.bfloat16)
    out3 = jax.block_until_ready(source_quantizer_forward(x3, weight, bias))
    ref3 = _reference(x3.astype(jnp.float32), weight, bias)
    assert jnp.allclose(out3, ref3, atol=2e-2, rtol=2e-2)

    print("KERNEL_OK")
</pallas_src>

<mosaic_0001>
module attributes {stable_mosaic.version = 11 : i64} {
  func.func @_single_block_kernel(%arg0: i32, %arg1: memref<8x4xf32, #tpu.memory_space<vmem>>, %arg2: memref<1x4xf32, #tpu.memory_space<vmem>>, %arg3: memref<8x1xf32, #tpu.memory_space<vmem>>) attributes {dimension_semantics = [#tpu.dimension_semantics<arbitrary>], iteration_bounds = array<i64: 1>, scalar_prefetch = 0 : i64, scratch_operands = 0 : i64, tpu.core_type = #tpu.core_type<tc>, window_params = [{transform_indices = @transform_0, window_bounds = array<i64: 8, 4>}, {pipeline_mode = #tpu.pipeline_mode<synchronous>, transform_indices = @transform_1, window_bounds = array<i64: 1, 4>}, {pipeline_mode = #tpu.pipeline_mode<synchronous>, transform_indices = @transform_2, window_bounds = array<i64: 8, 1>}]} {
    %c0 = arith.constant 0 : index
    %c0_0 = arith.constant 0 : index
    %0 = vector.load %arg1[%c0, %c0_0] : memref<8x4xf32, #tpu.memory_space<vmem>>, vector<8x4xf32>
    %c0_1 = arith.constant 0 : index
    %c0_2 = arith.constant 0 : index
    %1 = vector.load %arg2[%c0_1, %c0_2] : memref<1x4xf32, #tpu.memory_space<vmem>>, vector<1x4xf32>
    %2 = vector.broadcast %1 : vector<1x4xf32> to vector<8x4xf32>
    %3 = arith.mulf %0, %2 : vector<8x4xf32>
    %cst = arith.constant dense<0.000000e+00> : vector<8xf32>
    %4 = vector.multi_reduction <add>, %3, %cst [1] : vector<8x4xf32> to vector<8xf32>
    %5 = vector.shape_cast %4 : vector<8xf32> to vector<8x1xf32>
    %cst_3 = arith.constant dense<0xFF800000> : vector<1xf32>
    %6 = vector.multi_reduction <maximumf>, %5, %cst_3 [0] : vector<8x1xf32> to vector<1xf32>
    %7 = vector.shape_cast %6 : vector<1xf32> to vector<1x1xf32>
    %8 = vector.broadcast %7 : vector<1x1xf32> to vector<8x1xf32>
    %9 = arith.subf %5, %8 : vector<8x1xf32>
    %10 = math.exp %9 : vector<8x1xf32>
    %cst_4 = arith.constant dense<0.000000e+00> : vector<1xf32>
    %11 = vector.multi_reduction <add>, %10, %cst_4 [0] : vector<8x1xf32> to vector<1xf32>
    %12 = vector.shape_cast %11 : vector<1xf32> to vector<1x1xf32>
    %13 = vector.broadcast %12 : vector<1x1xf32> to vector<8x1xf32>
    %14 = arith.divf %10, %13 : vector<8x1xf32>
    %c0_5 = arith.constant 0 : index
    %c0_6 = arith.constant 0 : index
    %15 = vector.load %arg3[%c0_5, %c0_6] : memref<8x1xf32, #tpu.memory_space<vmem>>, vector<8x1xf32>
    tpu.vector_store %arg3[%c0_5, %c0_6], %14 {strides = array<i32>} : memref<8x1xf32, #tpu.memory_space<vmem>>, vector<8x1xf32>,
    return
  }
  func.func @transform_0(%arg0: i32) -> (i32, i32) {
    %c0_i32 = arith.constant 0 : i32
    %c0_i32_0 = arith.constant 0 : i32
    return %arg0, %c0_i32 : i32, i32
  }
  func.func @transform_1(%arg0: i32) -> (i32, i32) {
    %c0_i32 = arith.constant 0 : i32
    %c0_i32_0 = arith.constant 0 : i32
    %c0_i32_1 = arith.constant 0 : i32
    return %c0_i32, %c0_i32_0 : i32, i32
  }
  func.func @transform_2(%arg0: i32) -> (i32, i32) {
    %c0_i32 = arith.constant 0 : i32
    %c0_i32_0 = arith.constant 0 : i32
    %c0_i32_1 = arith.constant 0 : i32
    return %c0_i32, %c0_i32_0 : i32, i32
  }
}

</mosaic_0001>

<bundles_post_ra>
// kernel: tpu_custom_call.1
= control target key start
LH: loop header
LB: loop body
LE: loop exit
PB: predicated region body
PF: predicated region fallthrough
CT: control target
= control target key end

     0   :  { %vm20_vm0 = vcmask 31744   ;;  %vm41_vm1 = vcmask 7168   ;;  %s76_s0 = inlined_call_operand.vmem [shape: f32[8,4], index: 0, kind: input, shape index: {}]   ;;  %s77_s1 = inlined_call_operand.vmem [shape: f32[1,4], index: 1, kind: input, shape index: {}]   ;;  %s78_s2 = inlined_call_operand.vmem [shape: f32[8,1], index: 2, kind: output, shape index: {}]  }
   0x1   :  { %v11_v0 = vld [vmem:[%s76_s0] sm:$0xff] }
   0x2   :  { %v47_v1 = vld [vmem:[%s77_s1] ss:$0 sm:$0xff] }
   0x3   :  { %v19_v2 = vmul.f32 %v47_v1, %v11_v0 }
   0x5   :  { %v21_v3 = vsel %vm20_vm0, %v19_v2, 0.0 }
   0x6   :  { %22 = vadd.xlane.f32.xlu0 %v21_v3 }
  0x93   :  { %v23_v4 = vpop.xlane.xlu0 %22 }
  0x94   :  { %v24_v5 = vrot.slane %v23_v4, 4 }
  0x96   :  { %v25_v6 = vmax.f32 %v23_v4, %v24_v5 }
  0x98   :  { %v26_v7 = vrot.slane %v25_v6, 2 }
  0x9a   :  { %v27_v8 = vmax.f32 %v25_v6, %v26_v7 }
  0x9c   :  { %v28_v9 = vrot.slane %v27_v8, 1 }
  0x9e   :  { %v29_v10 = vmax.f32 %v27_v8, %v28_v9 }
  0xa0   :  { %v30_v11 = vsub.f32 %v23_v4, %v29_v10 }
  0xa2   :  { %v31_v12 = vmul.f32 1.442695, %v30_v11 }
  0xa4   :  { %48 = vpow2.f32 %v31_v12 }
  0xae   :  { %v49_v13 = vpop.eup %48 }
  0xaf   :  { %v33_v14 = vrot.slane %v49_v13, 4 }
  0xb1   :  { %v34_v15 = vadd.f32 %v49_v13, %v33_v14 }
  0xb3   :  { %v35_v16 = vrot.slane %v34_v15, 2 }
  0xb5   :  { %v36_v17 = vadd.f32 %v35_v16, %v34_v15 }
  0xb7   :  { %v37_v18 = vrot.slane %v36_v17, 1 }
  0xb9   :  { %v38_v19 = vadd.f32 %v37_v18, %v36_v17 }
  0xbb   :  { %50 = vrcp.f32 %v38_v19 }
  0xc5   :  { %v51_v20 = vpop.eup %50 }
  0xc6   :  { %v40_v21 = vmul.f32 %v51_v20, %v49_v13 }
  0xc8   :  { %42 = vst.msk [vmem:[%s78_s2] sm:$0xff] %vm41_vm1, %v40_v21 }

</bundles_post_ra>
